<compile_context>
chip_gen: v7x
topology: tpu7x:2x2x1
jax: 0.10.0
libtpu: 0.0.40
codegen_flags: <defaults>
</compile_context>

<pallas_src>
import functools

import jax
import jax.numpy as jnp
from jax.experimental import pallas as pl
from jax.experimental.pallas import tpu as pltpu


def _mlp_kernel(x_ref, w1_ref, b1_ref, w2_ref, b2_ref, w3_ref, b3_ref, o_ref):
    """One batch tile of the 8 -> 20 -> 20 -> 2 MLP.

    x_ref:  [TILE_B, F]    batch-major tile, straight from HBM (no wrapper transpose)
    w*_ref: [out, in]      PyTorch nn.Linear layout, VMEM-resident across all tiles
    b*_ref: [out, 1]
    o_ref:  [OUT, TILE_B]  feature-major (lane-dense) output tile
    """
    # On-chip transpose to feature-major: batch lands on the 128-wide lane axis for
    # every matmul / bias-add / ReLU / store. Runs on the XLU slot and overlaps with
    # the next tile's input DMA thanks to the double-buffered BlockSpec pipeline.
    x = x_ref[...].T                                                    # [F, TILE_B]

    # Hidden layer 1: ReLU(W1 @ x + b1)
    h1 = jnp.dot(w1_ref[...], x, preferred_element_type=jnp.float32)
    h1 = jnp.maximum(h1 + b1_ref[...], 0.0)
    # Hidden layer 2: ReLU(W2 @ h1 + b2)
    h2 = jnp.dot(w2_ref[...], h1, preferred_element_type=jnp.float32)
    h2 = jnp.maximum(h2 + b2_ref[...], 0.0)
    # Output layer: W3 @ h2 + b3 (no activation)
    out = jnp.dot(w3_ref[...], h2, preferred_element_type=jnp.float32)
    o_ref[...] = (out + b3_ref[...]).astype(o_ref.dtype)


@functools.partial(jax.jit, static_argnames=("tile_b",))
def linear_model_tabular(x, w1, b1, w2, b2, w3, b3, *, tile_b=32768):
    """Forward pass of LinearModelTabular.

    x:  [B, in_features] float32
    wi: [out_i, in_i]    float32 (PyTorch nn.Linear weight layout)
    bi: [out_i]          float32
    returns [B, out_features] float32
    """
    B, F = x.shape
    H1 = w1.shape[0]
    H2 = w2.shape[0]
    OUT = w3.shape[0]

    # ---- batch-tile selection -------------------------------------------------
    LANE = 128
    b128 = pl.cdiv(B, LANE) * LANE               # batch rounded up to the lane width
    tb = min(int(tile_b), 32768)                 # v7x VMEM-driven cap (64 MiB physical)
    tb = max(LANE, (tb // LANE) * LANE)          # multiple of 128
    tb = min(tb, b128)                           # don't over-pad small batches
    # Keep >= 4 grid steps for large batches so megacore (v7x) sharding and the
    # double-buffered pipeline have work to spread across.
    if b128 >= 4 * LANE:
        tb = min(tb, max(LANE, (b128 // 4) // LANE * LANE))
    b_pad = pl.cdiv(b128, tb) * tb
    num_tiles = b_pad // tb

    # ---- wrapper-side layout plumbing (no transposes, pad only if needed) ------
    x = x.astype(jnp.float32)
    if b_pad != B:
        # NOTE: padded rows compute ReLU(b1)->... garbage; they are sliced off below.
        x = jnp.pad(x, ((0, b_pad - B), (0, 0)))
    b1c = b1.reshape(H1, 1).astype(jnp.float32)
    b2c = b2.reshape(H2, 1).astype(jnp.float32)
    b3c = b3.reshape(OUT, 1).astype(jnp.float32)

    resident = lambda shape: pl.BlockSpec(shape, lambda i: (0, 0))  # stays in VMEM

    cost = pl.CostEstimate(
        flops=2 * b_pad * (F * H1 + H1 * H2 + H2 * OUT),
        transcendentals=0,
        bytes_accessed=4 * (b_pad * (F + OUT)
                            + F * H1 + H1 * H2 + H2 * OUT + H1 + H2 + OUT),
    )

    out_t = pl.pallas_call(
        _mlp_kernel,
        out_shape=jax.ShapeDtypeStruct((OUT, b_pad), jnp.float32),
        grid=(num_tiles,),
        in_specs=[
            pl.BlockSpec((tb, F), lambda i: (i, 0)),     # batch-major x tile
            resident(w1.shape), resident((H1, 1)),
            resident(w2.shape), resident((H2, 1)),
            resident(w3.shape), resident((OUT, 1)),
        ],
        out_specs=pl.BlockSpec((OUT, tb), lambda i: (0, i)),  # lane-dense store
        compiler_params=pltpu.CompilerParams(
            dimension_semantics=("parallel",),   # shard batch tiles across TCs (v7x)
            vmem_limit_bytes=56 * 1024 * 1024,   # > v5e/v6e defaults, < v7x physical
        ),
        cost_estimate=cost,
    )(x, w1.astype(jnp.float32), b1c,
      w2.astype(jnp.float32), b2c,
      w3.astype(jnp.float32), b3c)

    # Back to PyTorch layout [B, out_features]; drop batch padding.
    return out_t[:, :B].T


def init_params(key, input_features=8, hidden_layer1=20, hidden_layer2=20, out_features=2):
    """Deterministic init mirroring nn.Linear's U(-1/sqrt(fan_in), 1/sqrt(fan_in)).
    Weights use PyTorch layout: [out_features, in_features]; biases: [out_features]."""
    keys = jax.random.split(key, 6)

    def linear(kw, kb, fan_in, fan_out):
        bound = 1.0 / jnp.sqrt(fan_in)
        w = jax.random.uniform(kw, (fan_out, fan_in), jnp.float32, -bound, bound)
        b = jax.random.uniform(kb, (fan_out,), jnp.float32, -bound, bound)
        return w, b

    w1, b1 = linear(keys[0], keys[1], input_features, hidden_layer1)
    w2, b2 = linear(keys[2], keys[3], hidden_layer1, hidden_layer2)
    w3, b3 = linear(keys[4], keys[5], hidden_layer2, out_features)
    return w1, b1, w2, b2, w3, b3


if __name__ == "__main__":
    key = jax.random.PRNGKey(0)
    k_x, k_p = jax.random.split(key)

    input_features, h1d, h2d, out_features = 8, 20, 20, 2
    params = init_params(k_p, input_features, h1d, h2d, out_features)
    w1, b1, w2, b2, w3, b3 = params

    def ref_fwd(xin):
        y = jnp.maximum(xin @ w1.T + b1, 0.0)
        y = jnp.maximum(y @ w2.T + b2, 0.0)
        return y @ w3.T + b3

    # Small module-sized batch: [4, 8] -> [4, 2] (single tile, padded to 128 rows).
    x = jax.random.normal(k_x, (4, input_features), jnp.float32)
    out = jax.block_until_ready(linear_model_tabular(x, *params))
    assert out.shape == (4, out_features)
    assert jnp.allclose(out, ref_fwd(x), atol=1e-5, rtol=1e-5), (out, ref_fwd(x))

    # Non-multiple-of-tile batch with a small tile: exercises padding + multi-tile pipeline.
    xb = jax.random.normal(jax.random.PRNGKey(1), (300, input_features), jnp.float32)
    outb = jax.block_until_ready(linear_model_tabular(xb, *params, tile_b=128))
    assert jnp.allclose(outb, ref_fwd(xb), atol=1e-5, rtol=1e-5)

    # Larger batch on the default tile: hits the >=4-grid-steps clamp (tb=512, 4 tiles).
    xc = jax.random.normal(jax.random.PRNGKey(2), (2048, input_features), jnp.float32)
    outc = jax.block_until_ready(linear_model_tabular(xc, *params))
    assert jnp.allclose(outc, ref_fwd(xc), atol=1e-5, rtol=1e-5)

    print("KERNEL_OK")
</pallas_src>

<mosaic_0001>
module attributes {stable_mosaic.version = 11 : i64} {
  func.func @_mlp_kernel(%arg0: i32, %arg1: memref<128x8xf32, #tpu.memory_space<vmem>>, %arg2: memref<20x8xf32, #tpu.memory_space<vmem>>, %arg3: memref<20x1xf32, #tpu.memory_space<vmem>>, %arg4: memref<20x20xf32, #tpu.memory_space<vmem>>, %arg5: memref<20x1xf32, #tpu.memory_space<vmem>>, %arg6: memref<2x20xf32, #tpu.memory_space<vmem>>, %arg7: memref<2x1xf32, #tpu.memory_space<vmem>>, %arg8: memref<2x128xf32, #tpu.memory_space<vmem>>) attributes {dimension_semantics = [#tpu.dimension_semantics<parallel>], iteration_bounds = array<i64: 1>, scalar_prefetch = 0 : i64, scratch_operands = 0 : i64, tpu.core_type = #tpu.core_type<tc>, window_params = [{transform_indices = @transform_0, window_bounds = array<i64: 128, 8>}, {pipeline_mode = #tpu.pipeline_mode<synchronous>, transform_indices = @transform_1, window_bounds = array<i64: 20, 8>}, {pipeline_mode = #tpu.pipeline_mode<synchronous>, transform_indices = @transform_2, window_bounds = array<i64: 20, 1>}, {pipeline_mode = #tpu.pipeline_mode<synchronous>, transform_indices = @transform_3, window_bounds = array<i64: 20, 20>}, {pipeline_mode = #tpu.pipeline_mode<synchronous>, transform_indices = @transform_4, window_bounds = array<i64: 20, 1>}, {pipeline_mode = #tpu.pipeline_mode<synchronous>, transform_indices = @transform_5, window_bounds = array<i64: 2, 20>}, {pipeline_mode = #tpu.pipeline_mode<synchronous>, transform_indices = @transform_6, window_bounds = array<i64: 2, 1>}, {transform_indices = @transform_7, window_bounds = array<i64: 2, 128>}]} {
    %c0 = arith.constant 0 : index
    %c0_0 = arith.constant 0 : index
    %0 = vector.load %arg1[%c0, %c0_0] : memref<128x8xf32, #tpu.memory_space<vmem>>, vector<128x8xf32>
    %1 = tpu.transpose %0, [1, 0] : vector<128x8xf32> -> vector<8x128xf32>
    %c0_1 = arith.constant 0 : index
    %c0_2 = arith.constant 0 : index
    %2 = vector.load %arg2[%c0_1, %c0_2] : memref<20x8xf32, #tpu.memory_space<vmem>>, vector<20x8xf32>
    %cst = arith.constant dense<0.000000e+00> : vector<20x128xf32>
    %3 = tpu.matmul %2, %1, %cst {dimension_numbers = #tpu.dot_dimension_numbers<[1], [0], [0], [1], [0, 0, 1, 1], [], []>} : vector<20x8xf32>, vector<8x128xf32>, vector<20x128xf32> -> vector<20x128xf32>
    %c0_3 = arith.constant 0 : index
    %c0_4 = arith.constant 0 : index
    %4 = vector.load %arg3[%c0_3, %c0_4] : memref<20x1xf32, #tpu.memory_space<vmem>>, vector<20x1xf32>
    %5 = vector.broadcast %4 : vector<20x1xf32> to vector<20x128xf32>
    %6 = arith.addf %3, %5 : vector<20x128xf32>
    %cst_5 = arith.constant 0.000000e+00 : f32
    %7 = vector.broadcast %cst_5 : f32 to vector<20x128xf32>
    %8 = arith.maximumf %6, %7 : vector<20x128xf32>
    %c0_6 = arith.constant 0 : index
    %c0_7 = arith.constant 0 : index
    %9 = vector.load %arg4[%c0_6, %c0_7] : memref<20x20xf32, #tpu.memory_space<vmem>>, vector<20x20xf32>
    %cst_8 = arith.constant dense<0.000000e+00> : vector<20x128xf32>
    %10 = tpu.matmul %9, %8, %cst_8 {dimension_numbers = #tpu.dot_dimension_numbers<[1], [0], [0], [1], [0, 0, 1, 1], [], []>} : vector<20x20xf32>, vector<20x128xf32>, vector<20x128xf32> -> vector<20x128xf32>
    %c0_9 = arith.constant 0 : index
    %c0_10 = arith.constant 0 : index
    %11 = vector.load %arg5[%c0_9, %c0_10] : memref<20x1xf32, #tpu.memory_space<vmem>>, vector<20x1xf32>
    %12 = vector.broadcast %11 : vector<20x1xf32> to vector<20x128xf32>
    %13 = arith.addf %10, %12 : vector<20x128xf32>
    %cst_11 = arith.constant 0.000000e+00 : f32
    %14 = vector.broadcast %cst_11 : f32 to vector<20x128xf32>
    %15 = arith.maximumf %13, %14 : vector<20x128xf32>
    %c0_12 = arith.constant 0 : index
    %c0_13 = arith.constant 0 : index
    %16 = vector.load %arg6[%c0_12, %c0_13] : memref<2x20xf32, #tpu.memory_space<vmem>>, vector<2x20xf32>
    %cst_14 = arith.constant dense<0.000000e+00> : vector<2x128xf32>
    %17 = tpu.matmul %16, %15, %cst_14 {dimension_numbers = #tpu.dot_dimension_numbers<[1], [0], [0], [1], [0, 0, 1, 1], [], []>} : vector<2x20xf32>, vector<20x128xf32>, vector<2x128xf32> -> vector<2x128xf32>
    %c0_15 = arith.constant 0 : index
    %c0_16 = arith.constant 0 : index
    %18 = vector.load %arg7[%c0_15, %c0_16] : memref<2x1xf32, #tpu.memory_space<vmem>>, vector<2x1xf32>
    %19 = vector.broadcast %18 : vector<2x1xf32> to vector<2x128xf32>
    %20 = arith.addf %17, %19 : vector<2x128xf32>
    %c0_17 = arith.constant 0 : index
    %c0_18 = arith.constant 0 : index
    %21 = vector.load %arg8[%c0_17, %c0_18] : memref<2x128xf32, #tpu.memory_space<vmem>>, vector<2x128xf32>
    tpu.vector_store %arg8[%c0_17, %c0_18], %20 {strides = array<i32>} : memref<2x128xf32, #tpu.memory_space<vmem>>, vector<2x128xf32>,
    return
  }
  func.func @transform_0(%arg0: i32) -> (i32, i32) {
    %c0_i32 = arith.constant 0 : i32
    %c0_i32_0 = arith.constant 0 : i32
    return %arg0, %c0_i32 : i32, i32
  }
  func.func @transform_1(%arg0: i32) -> (i32, i32) {
    %c0_i32 = arith.constant 0 : i32
    %c0_i32_0 = arith.constant 0 : i32
    %c0_i32_1 = arith.constant 0 : i32
    return %c0_i32, %c0_i32_0 : i32, i32
  }
  func.func @transform_2(%arg0: i32) -> (i32, i32) {
    %c0_i32 = arith.constant 0 : i32
    %c0_i32_0 = arith.constant 0 : i32
    %c0_i32_1 = arith.constant 0 : i32
    return %c0_i32, %c0_i32_0 : i32, i32
  }
  func.func @transform_3(%arg0: i32) -> (i32, i32) {
    %c0_i32 = arith.constant 0 : i32
    %c0_i32_0 = arith.constant 0 : i32
    %c0_i32_1 = arith.constant 0 : i32
    return %c0_i32, %c0_i32_0 : i32, i32
  }
  func.func @transform_4(%arg0: i32) -> (i32, i32) {
    %c0_i32 = arith.constant 0 : i32
    %c0_i32_0 = arith.constant 0 : i32
    %c0_i32_1 = arith.constant 0 : i32
    return %c0_i32, %c0_i32_0 : i32, i32
  }
  func.func @transform_5(%arg0: i32) -> (i32, i32) {
    %c0_i32 = arith.constant 0 : i32
    %c0_i32_0 = arith.constant 0 : i32
    %c0_i32_1 = arith.constant 0 : i32
    return %c0_i32, %c0_i32_0 : i32, i32
  }
  func.func @transform_6(%arg0: i32) -> (i32, i32) {
    %c0_i32 = arith.constant 0 : i32
    %c0_i32_0 = arith.constant 0 : i32
    %c0_i32_1 = arith.constant 0 : i32
    return %c0_i32, %c0_i32_0 : i32, i32
  }
  func.func @transform_7(%arg0: i32) -> (i32, i32) {
    %c0_i32 = arith.constant 0 : i32
    %c0_i32_0 = arith.constant 0 : i32
    return %c0_i32, %arg0 : i32, i32
  }
}

</mosaic_0001>

<bundles_post_ra>
// kernel: linear_model_tabular.1
= control target key start
LH: loop header
LB: loop body
LE: loop exit
PB: predicated region body
PF: predicated region fallthrough
CT: control target
= control target key end

     0   :  { %vm63_vm0 = vcmask 64512   ;;  %v573_v0 = vmov 0.0|0.0   ;;  %vm574_vm2 = vmmov 0   ;;  %v575_v4 = vmov 0.0   ;;  %s767_s0 = inlined_call_operand.vmem [shape: f32[128,8], index: 0, kind: input, shape index: {}]   ;;  %s768_s2 = inlined_call_operand.vmem [shape: f32[20,1], index: 2, kind: input, shape index: {}]   ;;  %s769_s4 = inlined_call_operand.vmem [shape: f32[20,1], index: 4, kind: input, shape index: {}]   ;;  %s770_s6 = inlined_call_operand.vmem [shape: f32[2,1], index: 6, kind: input, shape index: {}]   ;;  %s771_s1 = inlined_call_operand.vmem [shape: f32[20,8], index: 1, kind: input, shape index: {}]   ;;  %s772_s3 = inlined_call_operand.vmem [shape: f32[20,20], index: 3, kind: input, shape index: {}]   ;;  %s773_s5 = inlined_call_operand.vmem [shape: f32[2,20], index: 5, kind: input, shape index: {}]   ;;  %s774_s7 = inlined_call_operand.vmem [shape: f32[2,128], index: 7, kind: output, shape index: {}]  }
   0x1   :  { %529 = vmatprep.subr.bf16.mxu0 %v573_v0  ;;  %v26_v1 = vld [vmem:[%s767_s0] sm:$0xff]  ;;  %v27_v2 = vld [vmem:[%s767_s0 + $0x8] sm:$0xff]  ;;  %vm626_vm1 = vmpackc.low %vm63_vm0, %vm63_vm0  ;;  %496 = vmatprep.mubr.msk.f32.mxu0 %vm574_vm2, %v575_v4  ;;  %v576_v6 = vmov 0   ;;  %vm235_vm3 = vcmask 1043456   ;;  %vm225_vm4 = vcmask 162816  }
   0x2   :  { %v530_v5 = vpack.c.bf16 %v27_v2, %v26_v1  ;;  %571 = vset.pattern.permute.xlu0 %v576_v6  ;;  %572 = vset.pattern.permute.xlu1 %v576_v6  ;;  %v28_v7 = vld [vmem:[%s767_s0 + $0x10] sm:$0xff]  ;;  %v29_v8 = vld [vmem:[%s767_s0 + $0x18] sm:$0xff]  ;;  %v45_v9 = vld [vmem:[%s768_s2] sm:$0xff] }
   0x3   :  { %561 = vmatprep.subr.bf16.mxu1 %v573_v0  ;;  %511 = vmatprep.mubr.msk.f32.mxu1 %vm574_vm2, %v575_v4  ;;  %v534_v10 = vpack.c.bf16 %v29_v8, %v28_v7  ;;  %v46_v11 = vld [vmem:[%s768_s2 + $0x8] sm:$0xff]  ;;  %v47_v12 = vld [vmem:[%s768_s2 + $0x10] sm:$0xf]  ;;  %v207_v13 = vld [vmem:[%s769_s4] sm:$0xff] }
   0x4   :  { %532 = vmatpush3.bf16.xpose.msk.msra.mxu0 %vm626_vm1, %v530_v5  ;;  %50 = vperm.xlu0 %571, %v45_v9   ;;  %v30_v14 = vld [vmem:[%s767_s0 + $0x20] sm:$0xff]  ;;  %v31_v15 = vld [vmem:[%s767_s0 + $0x28] sm:$0xff]  ;;  %v209_v17 = vld [vmem:[%s769_s4 + $0x10] sm:$0xf] }
   0x5   :  { %533 = vmatprep.subr.bf16.mxu0 %v573_v0  ;;  %60 = vperm.xlu1 %572, %v47_v12   ;;  %v208_v16 = vld [vmem:[%s769_s4 + $0x8] sm:$0xff]  ;;  %v538_v18 = vpack.c.bf16 %v31_v15, %v30_v14  ;;  %v323_v19 = vld [vmem:[%s770_s6] sm:$0x3]  ;;  %v32_v20 = vld [vmem:[%s767_s0 + $0x30] sm:$0xff] }
   0x6   :  { %v33_v21 = vld [vmem:[%s767_s0 + $0x38] sm:$0xff]  ;;  %v34_v23 = vld [vmem:[%s767_s0 + $0x40] sm:$0xff]  ;;  %v35_v24 = vld [vmem:[%s767_s0 + $0x48] sm:$0xff] }
   0x7   :  { %v542_v22 = vpack.c.bf16 %v33_v21, %v32_v20  ;;  %v546_v25 = vpack.c.bf16 %v35_v24, %v34_v23  ;;  %v36_v26 = vld [vmem:[%s767_s0 + $0x50] sm:$0xff]  ;;  %v37_v27 = vld [vmem:[%s767_s0 + $0x58] sm:$0xff]  ;;  %v38_v29 = vld [vmem:[%s767_s0 + $0x60] sm:$0xff] }
   0x8   :  { %55 = vperm.xlu0 %571, %v46_v11   ;;  %v550_v28 = vpack.c.bf16 %v37_v27, %v36_v26  ;;  %v39_v30 = vld [vmem:[%s767_s0 + $0x68] sm:$0xff]  ;;  %v40_v32 = vld [vmem:[%s767_s0 + $0x70] sm:$0xff]  ;;  %v41_v33 = vld [vmem:[%s767_s0 + $0x78] sm:$0xff] }
   0x9   :  { %212 = vperm.xlu1 %572, %v207_v13   ;;  %v554_v31 = vpack.c.bf16 %v39_v30, %v38_v29  ;;  %v558_v34 = vpack.c.bf16 %v41_v33, %v40_v32  ;;  %v42_v35 = vld [vmem:[%s771_s1] sm:$0xff]  ;;  %v43_v36 = vld [vmem:[%s771_s1 + $0x8] sm:$0xff]  ;;  %v44_v37 = vld [vmem:[%s771_s1 + $0x10] sm:$0xf] }
   0xa   :  { %v204_v54 = vld [vmem:[%s772_s3] sm:$0xff]  ;;  %v205_v55 = vld [vmem:[%s772_s3 + $0x8] sm:$0xff]  ;;  %v206_v56 = vld [vmem:[%s772_s3 + $0x10] sm:$0xf] }
   0xc   :  { %536 = vmatpush3.bf16.xpose.msk.msra.mxu0 %vm626_vm1, %v534_v10  ;;  %217 = vperm.xlu0 %571, %v208_v16   ;;  %v322_v10 = vld [vmem:[%s773_s5] sm:$0x3] }
   0xd   :  { %537 = vmatprep.subr.bf16.mxu0 %v573_v0  ;;  %222 = vperm.xlu1 %572, %v209_v17  }
  0x10   :  { %326 = vperm.xlu0 %571, %v323_v19  }
  0x14   :  { %540 = vmatpush3.bf16.xpose.msk.msra.mxu0 %vm626_vm1, %v538_v18 }
  0x15   :  { %541 = vmatprep.subr.bf16.mxu0 %v573_v0 }
  0x1c   :  { %544 = vmatpush3.bf16.xpose.msk.msra.mxu0 %vm626_vm1, %v542_v22 }
  0x1d   :  { %545 = vmatprep.subr.bf16.mxu0 %v573_v0 }
  0x24   :  { %548 = vmatpush3.bf16.xpose.msk.msra.mxu0 %vm626_vm1, %v546_v25 }
  0x25   :  { %549 = vmatprep.subr.bf16.mxu0 %v573_v0 }
  0x2c   :  { %552 = vmatpush3.bf16.xpose.msk.msra.mxu0 %vm626_vm1, %v550_v28 }
  0x2d   :  { %553 = vmatprep.subr.bf16.mxu0 %v573_v0 }
  0x34   :  { %556 = vmatpush3.bf16.xpose.msk.msra.mxu0 %vm626_vm1, %v554_v31 }
  0x35   :  { %557 = vmatprep.subr.bf16.mxu0 %v573_v0 }
  0x3c   :  { %560 = vmatpush3.bf16.xpose.msk.msra.mxu0 %vm626_vm1, %v558_v34 }
  0x43   :  { %497 = vmatmul.mubr.msk.f32.vlgmr.msra.gmra.mrb[0].mxu0 %vm63_vm0, %v42_v35 }
  0x44   :  { %499 = vmatprep.mubr.msk.f32.mxu0 %vm574_vm2, %v575_v4 }
  0x47   :  { %500 = vmatmul.mubr.msk.f32.gmra.mrb[2].mxu0 %vm63_vm0, %v43_v36 }
  0x48   :  { %502 = vmatprep.mubr.msk.f32.mxu0 %vm574_vm2, %v575_v4 }
  0x4b   :  { %503 = vmatmul.mubr.msk.f32.gmra.mrb[4].mxu0 %vm63_vm0, %v44_v37 }
  0x83   :  { %v51_v38 = vpop.permute.xlu0 %50 }
  0x84   :  { %v61_v48 = vpop.permute.xlu1 %60 }
  0x87   :  { %v56_v42 = vpop.permute.xlu0 %55 }
  0x88   :  { %v213_v59 = vpop.permute.xlu1 %212 }
  0x8b   :  { %v218_v61 = vpop.permute.xlu0 %217 }
  0x8c   :  { %v223_v3 = vpop.permute.xlu1 %222 }
  0x8f   :  { %v327_v11 = vpop.permute.xlu0 %326 }
 0x116   :  { %v187_v39 = vpop.f32.mrb[0].mxu0 }
 0x117   :  { %v498_v40 = vpop.f32.mrb[1].mxu0  ;;  %v188_v41 = vadd.f32 %v187_v39, %v51_v38 }
 0x119   :  { %v201_v46 = vmax.f32 %v188_v41, 0.0 }
 0x11a   :  { %v192_v43 = vpop.f32.mrb[2].mxu0 }
 0x11b   :  { %v193_v44 = vadd.f32 %v192_v43, %v56_v42  ;;  %v501_v45 = vpop.f32.mrb[3].mxu0 }
 0x11d   :  { %v202_v47 = vmax.f32 %v193_v44, 0.0 }
 0x11e   :  { %v197_v49 = vpop.f32.mrb[4].mxu0 }
 0x11f   :  { %v198_v50 = vadd.f32 %v197_v49, %v61_v48  ;;  %v504_v51 = vpop.f32.mrb[5].mxu0  ;;  %v562_v52 = vpack.c.bf16 %v202_v47, %v201_v46 }
 0x121   :  { %v203_v53 = vmax.f32 %v198_v50, 0.0  ;;  %563 = vmatpush3.bf16.msra.mxu1 %v562_v52 }
 0x122   :  { %509 = vmatprep.subr.mxu1 %v575_v4 }
 0x125   :  { %510 = vmatpush3.msk.msra.mxu1 %vm235_vm3, %v203_v53 }
 0x126   :  { %512 = vmatmul.mubr.msk.f32.vlgmr.msra.gmra.mrb[0].mxu1 %vm225_vm4, %v204_v54  ;;  %564 = vmatprep.subr.bf16.mxu1 %v573_v0 }
 0x127   :  { %514 = vmatprep.mubr.msk.f32.mxu1 %vm574_vm2, %v575_v4 }
 0x12a   :  { %515 = vmatmul.mubr.msk.f32.gmra.mrb[2].mxu1 %vm225_vm4, %v205_v55 }
 0x12b   :  { %517 = vmatprep.mubr.msk.f32.mxu1 %vm574_vm2, %v575_v4 }
 0x12e   :  { %518 = vmatmul.mubr.msk.f32.gmra.mrb[4].mxu1 %vm225_vm4, %v206_v56 }
 0x12f   :  { %526 = vmatprep.mubr.msk.f32.mxu1 %vm574_vm2, %v575_v4 }
 0x1f9   :  { %v305_v57 = vpop.f32.mrb[0].mxu1 }
 0x1fa   :  { %v513_v58 = vpop.f32.mrb[1].mxu1  ;;  %v306_v60 = vadd.f32 %v305_v57, %v213_v59 }
 0x1fc   :  { %v319_v1 = vmax.f32 %v306_v60, 0.0 }
 0x1fd   :  { %v310_v62 = vpop.f32.mrb[2].mxu1 }
 0x1fe   :  { %v311_v63 = vadd.f32 %v310_v62, %v218_v61  ;;  %v516_v0 = vpop.f32.mrb[3].mxu1 }
 0x200   :  { %v320_v2 = vmax.f32 %v311_v63, 0.0 }
 0x201   :  { %v315_v5 = vpop.f32.mrb[4].mxu1 }
 0x202   :  { %v565_v6 = vpack.c.bf16 %v320_v2, %v319_v1  ;;  %v316_v7 = vadd.f32 %v315_v5, %v223_v3  ;;  %v519_v8 = vpop.f32.mrb[5].mxu1 }
 0x204   :  { %566 = vmatpush3.bf16.msra.mxu1 %v565_v6  ;;  %v321_v9 = vmax.f32 %v316_v7, 0.0 }
 0x205   :  { %524 = vmatprep.subr.mxu1 %v575_v4 }
 0x208   :  { %525 = vmatpush3.msk.msra.mxu1 %vm235_vm3, %v321_v9 }
 0x209   :  { %527 = vmatmul.mubr.msk.f32.vlgmr.msra.gmra.mrb[6].mxu1 %vm225_vm4, %v322_v10 }
 0x2dc   :  { %v401_v12 = vpop.f32.mrb[6].mxu1 }
 0x2dd   :  { %v402_v13 = vadd.f32 %v401_v12, %v327_v11  ;;  %v528_v14 = vpop.f32.mrb[7].mxu1 }
 0x2df   :  { %405 = vst [vmem:[%s774_s7] sm:$0x3] %v402_v13 }

</bundles_post_ra>
